<compile_context>
chip_gen: v6e
topology: v6e:2x2x1
jax: 0.10.0
libtpu: 0.0.40
codegen_flags: <defaults>
</compile_context>

<pallas_src>
import re

import jax
import jax.numpy as jnp
from jax.experimental import pallas as pl
from jax.experimental.pallas import tpu as pltpu


def _mish_kernel(x_ref, o_ref):
    x = x_ref[...].astype(jnp.float32)
    # mish(x) = x * tanh(softplus(x)) = x * t / (t + 2),  t = e^x * (e^x + 2)
    # Clamp the exp arg at 20 (matches F.softplus threshold): for x > 20,
    # t ~ 2.4e17 so t/(t+2) == 1.0 in f32 and y == x, same as torch. Never inf.
    e = jnp.exp(jnp.minimum(x, 20.0))
    t = e * (e + 2.0)
    d = t + 2.0
    # EUP approx reciprocal + one VPU Newton step (r = r*(2 - d*r)):
    # ~1e-7 relative error, and the NR step is free VALU filler under the
    # HBM bound on all generations.
    # TODO(synk): for bf16 I/O on v7x the second EUP push (this reciprocal)
    # can become the binding VLIW slot; switch to a bitcast initial estimate
    # + 2 NR steps on the VPU there.
    r = pl.reciprocal(d, approx=True)
    r = r * (2.0 - d * r)
    o_ref[...] = (x * t * r).astype(o_ref.dtype)


def _tuning_for_backend():
    """(target_block_bytes, vmem_limit_bytes) picked per TPU generation."""
    gen = 0
    try:
        kind = jax.devices()[0].device_kind
        m = re.search(r"(\d+)", kind)
        if m:
            gen = int(m.group(1))
    except Exception:
        pass
    if gen >= 7:
        # v7x: ~3.2 TB/s per-TC HBM -> bigger blocks so the ~0.35us fixed
        # per-step cost stays <10% of step time. 2 bufs x (in+out) x 8 MiB
        # = 32 MiB pipelined VMEM, inside v7x's 64 MiB physical VMEM.
        return 8 * 1024 * 1024, 48 * 1024 * 1024
    # v5e / v6e (0.8-1.4 TB/s, 128 MiB VMEM): 4 MiB blocks ~90%+ of roofline.
    return 4 * 1024 * 1024, 32 * 1024 * 1024


def _mish_exact_jnp(x):
    """Single fused XLA elementwise pass (used for ragged sizes)."""
    xf = x.astype(jnp.float32)
    sp = jnp.where(xf > 20.0, xf, jnp.log1p(jnp.exp(jnp.minimum(xf, 20.0))))
    return (xf * jnp.tanh(sp)).astype(x.dtype)


def mish(x):
    """Elementwise Mish. Accepts any shape; computes on a flattened 2D slab."""
    orig_shape = x.shape
    dtype = x.dtype
    n = x.size
    if n == 0:
        return x

    if n % 128 != 0:
        # Ragged sizes (not lane-divisible, rare for conv activations): one
        # fused XLA pass (single HBM read+write) beats pallas + wrapper-side
        # pad/slice, each of which would be an extra unfused full-tensor pass.
        return _mish_exact_jnp(x).reshape(orig_shape)

    target_block_bytes, vmem_limit = _tuning_for_backend()

    # Widest lane count (multiple of 128) dividing n -> free bitcast reshape
    # and wide, fully unmasked lane-dense stores.
    lanes = 128
    for cand in (1024, 512, 256, 128):
        if n % cand == 0:
            lanes = cand
            break
    rows = n // lanes
    x2d = jnp.ravel(x).reshape(rows, lanes)

    itemsize = jnp.dtype(dtype).itemsize
    # Packed-sublane tile height per dtype: f32 (8,128), bf16 (16,128), int8/fp8 (32,128).
    sub = {4: 8, 2: 16, 1: 32}.get(itemsize, 8)

    # Multi-MiB row tile, rounded to the sublane tile.
    tr = max(sub, (target_block_bytes // (lanes * itemsize)) // sub * sub)
    if rows > 2 * sub:
        # Cap at ~half the rows so the grid has >= 2 steps and
        # dimension_semantics=("parallel",) can shard across v7x's two
        # TensorCores (harmless on single-TC v5e/v6e).
        half = -(-((rows + 1) // 2) // sub) * sub
        tr = min(tr, half)
    elif rows < tr:
        tr = rows  # single full-extent block: always a legal block shape
    grid = (pl.cdiv(rows, tr),)  # partial last block is masked by Pallas

    cost = pl.CostEstimate(
        flops=9 * n,
        transcendentals=2 * n,            # exp + approx reciprocal
        bytes_accessed=2 * n * itemsize,
    )

    out2d = pl.pallas_call(
        _mish_kernel,
        out_shape=jax.ShapeDtypeStruct((rows, lanes), dtype),
        grid_spec=pltpu.PrefetchScalarGridSpec(
            num_scalar_prefetch=0,
            grid=grid,
            in_specs=[pl.BlockSpec((tr, lanes), lambda i: (i, 0))],
            out_specs=pl.BlockSpec((tr, lanes), lambda i: (i, 0)),
        ),
        compiler_params=pltpu.CompilerParams(
            dimension_semantics=("parallel",),
            vmem_limit_bytes=vmem_limit,
        ),
        cost_estimate=cost,
    )(x2d)

    return out2d.reshape(orig_shape)


def mish_ref(x):
    """Pure-JAX reference matching PyTorch x * tanh(F.softplus(x))."""
    xf = x.astype(jnp.float32)
    sp = jnp.where(xf > 20.0, xf, jnp.log1p(jnp.exp(jnp.minimum(xf, 20.0))))
    return (xf * jnp.tanh(sp)).astype(x.dtype)


if __name__ == "__main__":
    key = jax.random.PRNGKey(0)

    # NCHW, matching PyTorch conv-activation convention (lane-divisible fast path).
    x = jax.random.normal(key, (2, 4, 16, 16), dtype=jnp.float32) * 3.0
    y = mish(x)
    jax.block_until_ready(y)
    y_ref = mish_ref(x)
    assert y.shape == x.shape and y.dtype == x.dtype
    assert jnp.allclose(y, y_ref, atol=1e-4, rtol=1e-4), "mismatch vs reference"

    # Ragged size: single fused XLA pass (no pad/slice HBM round-trips).
    x2 = jax.random.normal(jax.random.PRNGKey(1), (3, 5, 7), dtype=jnp.float32) * 3.0
    y2 = mish(x2)
    jax.block_until_ready(y2)
    assert y2.shape == x2.shape
    assert jnp.allclose(y2, mish_ref(x2), atol=1e-4, rtol=1e-4), "mismatch (ragged)"

    # Multi-step grid with a masked partial last row-block (30 rows, tr=16).
    x3 = jax.random.normal(jax.random.PRNGKey(2), (2, 3, 40, 128), dtype=jnp.float32) * 3.0
    y3 = mish(x3)
    jax.block_until_ready(y3)
    assert y3.shape == x3.shape
    assert jnp.allclose(y3, mish_ref(x3), atol=1e-4, rtol=1e-4), "mismatch (multi-block)"

    print("KERNEL_OK")
</pallas_src>

<mosaic_0001>
module attributes {stable_mosaic.version = 11 : i64} {
  func.func @_mish_kernel(%arg0: i32, %arg1: memref<2x1024xf32, #tpu.memory_space<vmem>>, %arg2: memref<2x1024xf32, #tpu.memory_space<vmem>>) attributes {dimension_semantics = [#tpu.dimension_semantics<parallel>], iteration_bounds = array<i64: 1>, scalar_prefetch = 0 : i64, scratch_operands = 0 : i64, tpu.core_type = #tpu.core_type<tc>, window_params = [{transform_indices = @transform_0, window_bounds = array<i64: 2, 1024>}, {transform_indices = @transform_1, window_bounds = array<i64: 2, 1024>}]} {
    %c0 = arith.constant 0 : index
    %c0_0 = arith.constant 0 : index
    %0 = vector.load %arg1[%c0, %c0_0] : memref<2x1024xf32, #tpu.memory_space<vmem>>, vector<2x1024xf32>
    %cst = arith.constant 2.000000e+01 : f32
    %1 = vector.broadcast %cst : f32 to vector<2x1024xf32>
    %2 = arith.minimumf %0, %1 : vector<2x1024xf32>
    %3 = math.exp %2 : vector<2x1024xf32>
    %cst_1 = arith.constant 2.000000e+00 : f32
    %4 = vector.broadcast %cst_1 : f32 to vector<2x1024xf32>
    %5 = arith.addf %3, %4 : vector<2x1024xf32>
    %6 = arith.mulf %3, %5 : vector<2x1024xf32>
    %cst_2 = arith.constant 2.000000e+00 : f32
    %7 = vector.broadcast %cst_2 : f32 to vector<2x1024xf32>
    %8 = arith.addf %6, %7 : vector<2x1024xf32>
    %9 = tpu.reciprocal %8 {approx = true} : vector<2x1024xf32> -> vector<2x1024xf32>
    %10 = arith.mulf %8, %9 : vector<2x1024xf32>
    %cst_3 = arith.constant 2.000000e+00 : f32
    %11 = vector.broadcast %cst_3 : f32 to vector<2x1024xf32>
    %12 = arith.subf %11, %10 : vector<2x1024xf32>
    %13 = arith.mulf %9, %12 : vector<2x1024xf32>
    %14 = arith.mulf %0, %6 : vector<2x1024xf32>
    %15 = arith.mulf %14, %13 : vector<2x1024xf32>
    %c0_4 = arith.constant 0 : index
    %c0_5 = arith.constant 0 : index
    %16 = vector.load %arg2[%c0_4, %c0_5] : memref<2x1024xf32, #tpu.memory_space<vmem>>, vector<2x1024xf32>
    tpu.vector_store %arg2[%c0_4, %c0_5], %15 {strides = array<i32>} : memref<2x1024xf32, #tpu.memory_space<vmem>>, vector<2x1024xf32>,
    return
  }
  func.func @transform_0(%arg0: i32) -> (i32, i32) {
    %c0_i32 = arith.constant 0 : i32
    %c0_i32_0 = arith.constant 0 : i32
    return %arg0, %c0_i32 : i32, i32
  }
  func.func @transform_1(%arg0: i32) -> (i32, i32) {
    %c0_i32 = arith.constant 0 : i32
    %c0_i32_0 = arith.constant 0 : i32
    return %arg0, %c0_i32 : i32, i32
  }
}

</mosaic_0001>

<bundles_post_ra>
// kernel: tpu_custom_call.1
= control target key start
LH: loop header
LB: loop body
LE: loop exit
PB: predicated region body
PF: predicated region fallthrough
CT: control target
= control target key end

     0   :  { %6 = vsyncpa [#allocation3], 0  ;;  %s136_s0 = inlined_call_operand.hbm [shape: f32[2,1024], index: 0, kind: input, shape index: {}]   ;;  %s137_s1 = inlined_call_operand.hbm [shape: f32[2,1024], index: 1, kind: output, shape index: {}]  }
   0x1   :  { %7 = vsyncpa [#allocation4], 0  ;;  %s118_s6 = smov [#allocation2]  }
   0x2   :  { %s14_s7 = sshll.u32 %s118_s6, 4  ;;  %s15_s7 = int_to_ptr.vmem [resolvable:$true] %s14_s7 }
   0x3   :  { %s82_s8 = scalar_lea.vmem %s15_s7, 256  ;;  %p87_p1 = scmp.lt.s32.totalorder %s15_s7, %s15_s7 }
   0x4   :  { %p83_p0 = scmp.ne.s32.totalorder %s15_s7, %s82_s8  ;;  %p88_p2 = scmp.lt.s32.totalorder %s82_s8, %s82_s8 }
   0x6   :  { %p89_p3 = por %p88_p2, %p87_p1 }
   0x8   :  { %p90_p4 = pnand %p89_p3, %p83_p0 }
   0xa   :  { %93 = shalt.err (!%p90_p4)
}
   0xb   :  { %17 = dma.hbm_to_vmem [thread:$0]  %s136_s0, 256, %s15_s7, [#allocation3]  }
   0xc   :  { %114 = dma.done.wait [#allocation3], 256  }
   0xd   :  { %115 = vsyncadd [#allocation3], 4294967040  ;;  %v21_v0 = vld [vmem:[#allocation2] sm:$0xff]  ;;  %v22_v1 = vld [vmem:[#allocation2 + $0x8] sm:$0xff]  ;;  %s119_s0 = smov [#allocation5]  }
   0xe   :  { %v23_v2 = vmin.f32 %v21_v0, 20.0  ;;  %v24_v3 = vmin.f32 %v22_v1, 20.0  ;;  %s55_s11 = sshll.u32 %s119_s0, 4  ;;  %s56_s11 = int_to_ptr.vmem [resolvable:$true] %s55_s11 }
   0xf   :  { %s94_s12 = scalar_lea.vmem %s56_s11, 256  ;;  %p99_p6 = scmp.lt.s32.totalorder %s56_s11, %s56_s11 }
  0x10   :  { %v25_v4 = vmul.f32 1.442695, %v23_v2  ;;  %v27_v5 = vmul.f32 1.442695, %v24_v3  ;;  %p95_p5 = scmp.ne.s32.totalorder %s56_s11, %s94_s12  ;;  %p100_p7 = scmp.lt.s32.totalorder %s94_s12, %s94_s12 }
  0x12   :  { %66 = vpow2.f32 %v25_v4  ;;  %p101_p8 = por %p100_p7, %p99_p6 }
  0x13   :  { %68 = vpow2.f32 %v27_v5 }
  0x14   :  { %p102_p9 = pnand %p101_p8, %p95_p5 }
  0x1f   :  { %v67_v6 = vpop.eup %66 }
  0x20   :  { %v69_v7 = vpop.eup %68  ;;  %v29_v8 = vadd.f32 2.0, %v67_v6 }
  0x21   :  { %v30_v9 = vadd.f32 2.0, %v69_v7 }
  0x22   :  { %v31_v10 = vmul.f32 %v67_v6, %v29_v8 }
  0x23   :  { %v32_v11 = vmul.f32 %v69_v7, %v30_v9 }
  0x24   :  { %v33_v12 = vadd.f32 2.0, %v31_v10  ;;  %v43_v19 = vmul.f32 %v31_v10, %v21_v0 }
  0x25   :  { %v34_v13 = vadd.f32 2.0, %v32_v11  ;;  %v44_v21 = vmul.f32 %v32_v11, %v22_v1 }
  0x26   :  { %70 = vrcp.f32 %v33_v12 }
  0x27   :  { %72 = vrcp.f32 %v34_v13 }
  0x33   :  { %v71_v14 = vpop.eup %70 }
  0x34   :  { %v73_v15 = vpop.eup %72  ;;  %v37_v16 = vmul.f32 %v71_v14, %v33_v12 }
  0x35   :  { %v38_v17 = vmul.f32 %v73_v15, %v34_v13 }
  0x36   :  { %v39_v18 = vsub.f32 2.0, %v37_v16 }
  0x37   :  { %v40_v20 = vsub.f32 2.0, %v38_v17 }
  0x38   :  { %v41_v22 = vmul.f32 %v71_v14, %v39_v18 }
  0x39   :  { %v42_v23 = vmul.f32 %v73_v15, %v40_v20 }
  0x3a   :  { %v45_v24 = vmul.f32 %v43_v19, %v41_v22 }
  0x3b   :  { %v46_v25 = vmul.f32 %v44_v21, %v42_v23 }
  0x3c   :  { %47 = vst [vmem:[#allocation5] sm:$0xff] %v45_v24 }
  0x3d   :  { %48 = vst [vmem:[#allocation5 + $0x8] sm:$0xff] %v46_v25 }
  0x3e   :  { %105 = shalt.err (!%p102_p9)
}
  0x3f   :  { %58 = dma.vmem_to_hbm [thread:$0]  %s56_s11, 256, %s137_s1, [#allocation4]  }
  0x40   :  { %116 = dma.done.wait [#allocation4], 256  }
  0x41   :  { %117 = vsyncadd [#allocation4], 4294967040 }
  0x42   :  { %62 = vsyncpa [#allocation3], 1 }
  0x43   :  { %63 = vsyncpa [#allocation4], 1 }

</bundles_post_ra>
